<compile_context>
chip_gen: v7x
topology: tpu7x:2x2x1
jax: 0.10.0
libtpu: 0.0.40
codegen_flags: <defaults>
</compile_context>

<pallas_src>
import jax
import jax.numpy as jnp
from jax import lax
from jax.experimental import pallas as pl
from jax.experimental.pallas import tpu as pltpu


def _lstm_kernel(x_ref, wih_ref, bias_ref, whh_ref, h_out_ref):
    # x_ref:     (BT, seq) f32   one (padded) batch tile of the input
    # wih_ref:   (1, 4H)   f32   W_ih^T (in_dim == 1), gate order (i, f, o, g)
    # bias_ref:  (1, 4H)   f32   b_ih + b_hh, same gate order
    # whh_ref:   (H, 4H)   bf16  W_hh^T, same gate order (resident all steps)
    # h_out_ref: (BT, H)   f32   final hidden state for this batch tile
    bt = x_ref.shape[0]
    seq = x_ref.shape[1]
    H = h_out_ref.shape[1]

    wih = wih_ref[...]          # loaded once
    bias = bias_ref[...]        # loaded once
    whh = whh_ref[...]          # loaded once, reused every step

    def gate_math(gates, c):
        if 4 * H <= 128:
            # 4H fits one lane tile: full-vreg sigmoid + tanh are the same
            # single EUP pass each as masked partial passes, with no
            # lane-select plumbing.  (exp-based sigmoid: guaranteed lowering.)
            sig = 1.0 / (1.0 + jnp.exp(-gates))
            tnh = jnp.tanh(gates)
            i, f, o = sig[:, 0:H], sig[:, H:2 * H], sig[:, 2 * H:3 * H]
            g = tnh[:, 3 * H:]
        else:
            sig = 1.0 / (1.0 + jnp.exp(-gates[:, :3 * H]))
            i, f, o = sig[:, 0:H], sig[:, H:2 * H], sig[:, 2 * H:]
            g = jnp.tanh(gates[:, 3 * H:])
        c_new = f * c + i * g
        h_new = o * jnp.tanh(c_new)
        return h_new, c_new

    # --- Peeled t = 0: h0 = c0 = 0, so there is no recurrent matmul. ---
    gates0 = x_ref[:, 0:1] * wih + bias                       # VPU broadcast-FMA
    h, c = gate_math(gates0, jnp.zeros((bt, H), jnp.float32))

    def step(t, carry):
        h, c = carry
        # Per-step input projection: rank-1 broadcast-FMA on the VPU; overlaps
        # the MXU recurrent matmul in the pipelined/unrolled schedule.
        xw_t = x_ref[:, pl.ds(t, 1)] * wih + bias
        # TODO(synk): on v7x, drive the MXU explicitly (matmul_push_rhs once
        # before the loop, matmul_acc_lhs/matmul_pop per step) to keep W_hh
        # staged across steps and fold xw_t into the MRB accumulate.
        gates = xw_t + jnp.dot(h.astype(whh.dtype), whh,
                               preferred_element_type=jnp.float32)
        return gate_math(gates, c)

    # Full unroll only for small static seq (LLO scheduling visibility);
    # partial unroll bounds instruction memory / vreg live ranges for long seq.
    unroll = True if seq <= 32 else 8
    h, _ = lax.fori_loop(1, seq, step, (h, c), unroll=unroll)
    h_out_ref[...] = h


def _round_up(n, m):
    return ((n + m - 1) // m) * m


def pattern_lstm_forward(x, w_ih, w_hh, b_ih, b_hh):
    """x: (batch, seq) f32.  Weights in PyTorch nn.LSTM layout:
       w_ih: (4H, 1), w_hh: (4H, H), b_ih / b_hh: (4H,).  Returns h_n: (batch, H)."""
    B, seq = x.shape
    H = w_hh.shape[1]

    # --- Glue (plain JAX): gate-column permutation + layout plumbing only. ---
    # PyTorch gate order is (i, f, g, o); permute to (i, f, o, g) so one
    # contiguous sigmoid block covers i/f/o and one tanh block covers g.
    perm = jnp.concatenate(
        [jnp.arange(0, 2 * H), jnp.arange(3 * H, 4 * H), jnp.arange(2 * H, 3 * H)])
    wih_t = jnp.transpose(w_ih, (1, 0)).astype(jnp.float32)[:, perm]      # (1, 4H)
    whh_t = jnp.transpose(w_hh, (1, 0)).astype(jnp.float32)[:, perm]      # (H, 4H)
    bias = ((b_ih + b_hh).astype(jnp.float32)[perm])[None, :]             # (1, 4H)
    # Cast W_hh once: single bf16 MXU pass with f32 accumulation per step.
    whh_bf16 = whh_t.astype(jnp.bfloat16)

    # Pad batch to a sublane multiple and tile it over a "parallel" grid axis.
    block_b = min(128, _round_up(B, 8))
    b_pad = _round_up(B, block_b)
    x_p = jnp.pad(x.astype(jnp.float32), ((0, b_pad - B), (0, 0)))

    out = pl.pallas_call(
        _lstm_kernel,
        out_shape=jax.ShapeDtypeStruct((b_pad, H), jnp.float32),
        grid=(b_pad // block_b,),
        in_specs=[
            pl.BlockSpec((block_b, seq), lambda i: (i, 0)),    # x batch tile
            pl.BlockSpec((1, 4 * H), lambda i: (0, 0)),        # W_ih^T (bcast)
            pl.BlockSpec((1, 4 * H), lambda i: (0, 0)),        # bias   (bcast)
            pl.BlockSpec((H, 4 * H), lambda i: (0, 0)),        # W_hh^T (bcast)
        ],
        out_specs=pl.BlockSpec((block_b, H), lambda i: (i, 0)),
        compiler_params=pltpu.CompilerParams(
            dimension_semantics=("parallel",)),
    )(x_p, wih_t, bias, whh_bf16)
    # TODO(synk): for very long seq, stream time-chunks of x from pl.ANY with
    # make_async_copy (v7x: 64 MiB VMEM), and set vmem_limit_bytes explicitly
    # on v5e (16 MiB scoped default) once batch tiles grow.
    return out[:B]


def _reference_lstm(x, w_ih, w_hh, b_ih, b_hh):
    """Pure-JAX reference mirroring torch.nn.LSTM forward (batch_first).
    The recurrent matmul uses the same bf16-operand / f32-accumulate rounding
    as the kernel (the MXU is bf16-native; true-f32 parity would need
    Precision.HIGHEST and is documented rather than enforced)."""
    B, seq = x.shape
    H = w_hh.shape[1]
    wih_t = w_ih.astype(jnp.float32).T                               # (1, 4H)
    whh_bf = w_hh.astype(jnp.float32).T.astype(jnp.bfloat16)         # (H, 4H)
    bias = (b_ih + b_hh).astype(jnp.float32)

    def step(carry, x_t):
        h, c = carry
        gates = (x_t[:, None] * wih_t
                 + jnp.dot(h.astype(jnp.bfloat16), whh_bf,
                           preferred_element_type=jnp.float32)
                 + bias)
        i = jax.nn.sigmoid(gates[:, 0:H])
        f = jax.nn.sigmoid(gates[:, H:2 * H])
        g = jnp.tanh(gates[:, 2 * H:3 * H])
        o = jax.nn.sigmoid(gates[:, 3 * H:4 * H])
        c = f * c + i * g
        h = o * jnp.tanh(c)
        return (h, c), None

    h0 = jnp.zeros((B, H), jnp.float32)
    c0 = jnp.zeros((B, H), jnp.float32)
    (h, _), _ = lax.scan(step, (h0, c0), jnp.transpose(x.astype(jnp.float32)))
    return h


if __name__ == "__main__":
    # in_dim = 1 is implied by x.unsqueeze(-1); hidden = 32, batch = 2, seq = 8.
    IN_DIM, OUT_DIM = 1, 32
    B, SEQ = 2, 8

    key = jax.random.PRNGKey(0)
    k_x, k_wih, k_whh, k_bih, k_bhh = jax.random.split(key, 5)

    bound = 1.0 / (OUT_DIM ** 0.5)   # PyTorch nn.LSTM default init range
    w_ih = jax.random.uniform(k_wih, (4 * OUT_DIM, IN_DIM), jnp.float32, -bound, bound)
    w_hh = jax.random.uniform(k_whh, (4 * OUT_DIM, OUT_DIM), jnp.float32, -bound, bound)
    b_ih = jax.random.uniform(k_bih, (4 * OUT_DIM,), jnp.float32, -bound, bound)
    b_hh = jax.random.uniform(k_bhh, (4 * OUT_DIM,), jnp.float32, -bound, bound)

    x = jax.random.normal(k_x, (B, SEQ), jnp.float32)

    out = jax.block_until_ready(pattern_lstm_forward(x, w_ih, w_hh, b_ih, b_hh))
    ref = jax.block_until_ready(_reference_lstm(x, w_ih, w_hh, b_ih, b_hh))

    assert out.shape == (B, OUT_DIM)
    # Tolerance covers EUP-vs-XLA transcendental approximation differences over
    # the 8-step recurrence; the matmul rounding is identical on both sides.
    assert jnp.allclose(out, ref, atol=5e-5, rtol=5e-5), "mismatch vs reference"

    print("KERNEL_OK")
</pallas_src>

<mosaic_0001>
module attributes {stable_mosaic.version = 11 : i64} {
  func.func @_lstm_kernel(%arg0: i32, %arg1: memref<8x8xf32, #tpu.memory_space<vmem>>, %arg2: memref<1x128xf32, #tpu.memory_space<vmem>>, %arg3: memref<1x128xf32, #tpu.memory_space<vmem>>, %arg4: memref<32x128xbf16, #tpu.memory_space<vmem>>, %arg5: memref<8x32xf32, #tpu.memory_space<vmem>>) attributes {dimension_semantics = [#tpu.dimension_semantics<parallel>], iteration_bounds = array<i64: 1>, scalar_prefetch = 0 : i64, scratch_operands = 0 : i64, tpu.core_type = #tpu.core_type<tc>, window_params = [{transform_indices = @transform_0, window_bounds = array<i64: 8, 8>}, {pipeline_mode = #tpu.pipeline_mode<synchronous>, transform_indices = @transform_1, window_bounds = array<i64: 1, 128>}, {pipeline_mode = #tpu.pipeline_mode<synchronous>, transform_indices = @transform_2, window_bounds = array<i64: 1, 128>}, {pipeline_mode = #tpu.pipeline_mode<synchronous>, transform_indices = @transform_3, window_bounds = array<i64: 32, 128>}, {transform_indices = @transform_4, window_bounds = array<i64: 8, 32>}]} {
    %c0 = arith.constant 0 : index
    %c0_0 = arith.constant 0 : index
    %0 = vector.load %arg2[%c0, %c0_0] : memref<1x128xf32, #tpu.memory_space<vmem>>, vector<1x128xf32>
    %c0_1 = arith.constant 0 : index
    %c0_2 = arith.constant 0 : index
    %1 = vector.load %arg3[%c0_1, %c0_2] : memref<1x128xf32, #tpu.memory_space<vmem>>, vector<1x128xf32>
    %c0_3 = arith.constant 0 : index
    %c0_4 = arith.constant 0 : index
    %2 = vector.load %arg4[%c0_3, %c0_4] : memref<32x128xbf16, #tpu.memory_space<vmem>>, vector<32x128xbf16>
    %c0_5 = arith.constant 0 : index
    %c0_6 = arith.constant 0 : index
    %3 = vector.load %arg1[%c0_5, %c0_6] : memref<8x8xf32, #tpu.memory_space<vmem>>, vector<8x1xf32>
    %4 = vector.broadcast %3 : vector<8x1xf32> to vector<8x128xf32>
    %5 = vector.broadcast %0 : vector<1x128xf32> to vector<8x128xf32>
    %6 = arith.mulf %4, %5 : vector<8x128xf32>
    %7 = vector.broadcast %1 : vector<1x128xf32> to vector<8x128xf32>
    %8 = arith.addf %6, %7 : vector<8x128xf32>
    %cst = arith.constant 0.000000e+00 : f32
    %9 = vector.broadcast %cst : f32 to vector<8x32xf32>
    %cst_7 = arith.constant 0.000000e+00 : f32
    %10 = vector.broadcast %cst_7 : f32 to vector<8x128xf32>
    %11 = arith.subf %10, %8 : vector<8x128xf32>
    %12 = math.exp %11 : vector<8x128xf32>
    %cst_8 = arith.constant 1.000000e+00 : f32
    %13 = vector.broadcast %cst_8 : f32 to vector<8x128xf32>
    %14 = arith.addf %13, %12 : vector<8x128xf32>
    %cst_9 = arith.constant 1.000000e+00 : f32
    %15 = vector.broadcast %cst_9 : f32 to vector<8x128xf32>
    %16 = arith.divf %15, %14 : vector<8x128xf32>
    %17 = math.tanh %8 : vector<8x128xf32>
    %18 = vector.extract_strided_slice %16 {offsets = [0, 0], sizes = [8, 32], strides = [1, 1]} : vector<8x128xf32> to vector<8x32xf32>
    %19 = vector.extract_strided_slice %16 {offsets = [0, 32], sizes = [8, 32], strides = [1, 1]} : vector<8x128xf32> to vector<8x32xf32>
    %20 = vector.extract_strided_slice %16 {offsets = [0, 64], sizes = [8, 32], strides = [1, 1]} : vector<8x128xf32> to vector<8x32xf32>
    %21 = vector.extract_strided_slice %17 {offsets = [0, 96], sizes = [8, 32], strides = [1, 1]} : vector<8x128xf32> to vector<8x32xf32>
    %22 = arith.mulf %19, %9 : vector<8x32xf32>
    %23 = arith.mulf %18, %21 : vector<8x32xf32>
    %24 = arith.addf %22, %23 : vector<8x32xf32>
    %25 = math.tanh %24 : vector<8x32xf32>
    %26 = arith.mulf %20, %25 : vector<8x32xf32>
    %c1_i32 = arith.constant 1 : i32
    %c0_10 = arith.constant 0 : index
    %27 = arith.index_cast %c1_i32 : i32 to index
    %28 = vector.load %arg1[%c0_10, %27] : memref<8x8xf32, #tpu.memory_space<vmem>>, vector<8x1xf32>
    %29 = vector.broadcast %28 : vector<8x1xf32> to vector<8x128xf32>
    %30 = vector.broadcast %0 : vector<1x128xf32> to vector<8x128xf32>
    %31 = arith.mulf %29, %30 : vector<8x128xf32>
    %32 = vector.broadcast %1 : vector<1x128xf32> to vector<8x128xf32>
    %33 = arith.addf %31, %32 : vector<8x128xf32>
    %34 = arith.truncf %26 : vector<8x32xf32> to vector<8x32xbf16>
    %cst_11 = arith.constant dense<0.000000e+00> : vector<8x128xf32>
    %35 = tpu.matmul %34, %2, %cst_11 {dimension_numbers = #tpu.dot_dimension_numbers<[1], [0], [0], [1], [0, 0, 1, 1], [], []>} : vector<8x32xbf16>, vector<32x128xbf16>, vector<8x128xf32> -> vector<8x128xf32>
    %36 = arith.addf %33, %35 : vector<8x128xf32>
    %cst_12 = arith.constant 0.000000e+00 : f32
    %37 = vector.broadcast %cst_12 : f32 to vector<8x128xf32>
    %38 = arith.subf %37, %36 : vector<8x128xf32>
    %39 = math.exp %38 : vector<8x128xf32>
    %cst_13 = arith.constant 1.000000e+00 : f32
    %40 = vector.broadcast %cst_13 : f32 to vector<8x128xf32>
    %41 = arith.addf %40, %39 : vector<8x128xf32>
    %cst_14 = arith.constant 1.000000e+00 : f32
    %42 = vector.broadcast %cst_14 : f32 to vector<8x128xf32>
    %43 = arith.divf %42, %41 : vector<8x128xf32>
    %44 = math.tanh %36 : vector<8x128xf32>
    %45 = vector.extract_strided_slice %43 {offsets = [0, 0], sizes = [8, 32], strides = [1, 1]} : vector<8x128xf32> to vector<8x32xf32>
    %46 = vector.extract_strided_slice %43 {offsets = [0, 32], sizes = [8, 32], strides = [1, 1]} : vector<8x128xf32> to vector<8x32xf32>
    %47 = vector.extract_strided_slice %43 {offsets = [0, 64], sizes = [8, 32], strides = [1, 1]} : vector<8x128xf32> to vector<8x32xf32>
    %48 = vector.extract_strided_slice %44 {offsets = [0, 96], sizes = [8, 32], strides = [1, 1]} : vector<8x128xf32> to vector<8x32xf32>
    %49 = arith.mulf %46, %24 : vector<8x32xf32>
    %50 = arith.mulf %45, %48 : vector<8x32xf32>
    %51 = arith.addf %49, %50 : vector<8x32xf32>
    %52 = math.tanh %51 : vector<8x32xf32>
    %53 = arith.mulf %47, %52 : vector<8x32xf32>
    %c2_i32 = arith.constant 2 : i32
    %c0_15 = arith.constant 0 : index
    %54 = arith.index_cast %c2_i32 : i32 to index
    %55 = vector.load %arg1[%c0_15, %54] : memref<8x8xf32, #tpu.memory_space<vmem>>, vector<8x1xf32>
    %56 = vector.broadcast %55 : vector<8x1xf32> to vector<8x128xf32>
    %57 = vector.broadcast %0 : vector<1x128xf32> to vector<8x128xf32>
    %58 = arith.mulf %56, %57 : vector<8x128xf32>
    %59 = vector.broadcast %1 : vector<1x128xf32> to vector<8x128xf32>
    %60 = arith.addf %58, %59 : vector<8x128xf32>
    %61 = arith.truncf %53 : vector<8x32xf32> to vector<8x32xbf16>
    %cst_16 = arith.constant dense<0.000000e+00> : vector<8x128xf32>
    %62 = tpu.matmul %61, %2, %cst_16 {dimension_numbers = #tpu.dot_dimension_numbers<[1], [0], [0], [1], [0, 0, 1, 1], [], []>} : vector<8x32xbf16>, vector<32x128xbf16>, vector<8x128xf32> -> vector<8x128xf32>
    %63 = arith.addf %60, %62 : vector<8x128xf32>
    %cst_17 = arith.constant 0.000000e+00 : f32
    %64 = vector.broadcast %cst_17 : f32 to vector<8x128xf32>
    %65 = arith.subf %64, %63 : vector<8x128xf32>
    %66 = math.exp %65 : vector<8x128xf32>
    %cst_18 = arith.constant 1.000000e+00 : f32
    %67 = vector.broadcast %cst_18 : f32 to vector<8x128xf32>
    %68 = arith.addf %67, %66 : vector<8x128xf32>
    %cst_19 = arith.constant 1.000000e+00 : f32
    %69 = vector.broadcast %cst_19 : f32 to vector<8x128xf32>
    %70 = arith.divf %69, %68 : vector<8x128xf32>
    %71 = math.tanh %63 : vector<8x128xf32>
    %72 = vector.extract_strided_slice %70 {offsets = [0, 0], sizes = [8, 32], strides = [1, 1]} : vector<8x128xf32> to vector<8x32xf32>
    %73 = vector.extract_strided_slice %70 {offsets = [0, 32], sizes = [8, 32], strides = [1, 1]} : vector<8x128xf32> to vector<8x32xf32>
    %74 = vector.extract_strided_slice %70 {offsets = [0, 64], sizes = [8, 32], strides = [1, 1]} : vector<8x128xf32> to vector<8x32xf32>
    %75 = vector.extract_strided_slice %71 {offsets = [0, 96], sizes = [8, 32], strides = [1, 1]} : vector<8x128xf32> to vector<8x32xf32>
    %76 = arith.mulf %73, %51 : vector<8x32xf32>
    %77 = arith.mulf %72, %75 : vector<8x32xf32>
    %78 = arith.addf %76, %77 : vector<8x32xf32>
    %79 = math.tanh %78 : vector<8x32xf32>
    %80 = arith.mulf %74, %79 : vector<8x32xf32>
    %c3_i32 = arith.constant 3 : i32
    %c0_20 = arith.constant 0 : index
    %81 = arith.index_cast %c3_i32 : i32 to index
    %82 = vector.load %arg1[%c0_20, %81] : memref<8x8xf32, #tpu.memory_space<vmem>>, vector<8x1xf32>
    %83 = vector.broadcast %82 : vector<8x1xf32> to vector<8x128xf32>
    %84 = vector.broadcast %0 : vector<1x128xf32> to vector<8x128xf32>
    %85 = arith.mulf %83, %84 : vector<8x128xf32>
    %86 = vector.broadcast %1 : vector<1x128xf32> to vector<8x128xf32>
    %87 = arith.addf %85, %86 : vector<8x128xf32>
    %88 = arith.truncf %80 : vector<8x32xf32> to vector<8x32xbf16>
    %cst_21 = arith.constant dense<0.000000e+00> : vector<8x128xf32>
    %89 = tpu.matmul %88, %2, %cst_21 {dimension_numbers = #tpu.dot_dimension_numbers<[1], [0], [0], [1], [0, 0, 1, 1], [], []>} : vector<8x32xbf16>, vector<32x128xbf16>, vector<8x128xf32> -> vector<8x128xf32>
    %90 = arith.addf %87, %89 : vector<8x128xf32>
    %cst_22 = arith.constant 0.000000e+00 : f32
    %91 = vector.broadcast %cst_22 : f32 to vector<8x128xf32>
    %92 = arith.subf %91, %90 : vector<8x128xf32>
    %93 = math.exp %92 : vector<8x128xf32>
    %cst_23 = arith.constant 1.000000e+00 : f32
    %94 = vector.broadcast %cst_23 : f32 to vector<8x128xf32>
    %95 = arith.addf %94, %93 : vector<8x128xf32>
    %cst_24 = arith.constant 1.000000e+00 : f32
    %96 = vector.broadcast %cst_24 : f32 to vector<8x128xf32>
    %97 = arith.divf %96, %95 : vector<8x128xf32>
    %98 = math.tanh %90 : vector<8x128xf32>
    %99 = vector.extract_strided_slice %97 {offsets = [0, 0], sizes = [8, 32], strides = [1, 1]} : vector<8x128xf32> to vector<8x32xf32>
    %100 = vector.extract_strided_slice %97 {offsets = [0, 32], sizes = [8, 32], strides = [1, 1]} : vector<8x128xf32> to vector<8x32xf32>
    %101 = vector.extract_strided_slice %97 {offsets = [0, 64], sizes = [8, 32], strides = [1, 1]} : vector<8x128xf32> to vector<8x32xf32>
    %102 = vector.extract_strided_slice %98 {offsets = [0, 96], sizes = [8, 32], strides = [1, 1]} : vector<8x128xf32> to vector<8x32xf32>
    %103 = arith.mulf %100, %78 : vector<8x32xf32>
    %104 = arith.mulf %99, %102 : vector<8x32xf32>
    %105 = arith.addf %103, %104 : vector<8x32xf32>
    %106 = math.tanh %105 : vector<8x32xf32>
    %107 = arith.mulf %101, %106 : vector<8x32xf32>
    %c4_i32 = arith.constant 4 : i32
    %c0_25 = arith.constant 0 : index
    %108 = arith.index_cast %c4_i32 : i32 to index
    %109 = vector.load %arg1[%c0_25, %108] : memref<8x8xf32, #tpu.memory_space<vmem>>, vector<8x1xf32>
    %110 = vector.broadcast %109 : vector<8x1xf32> to vector<8x128xf32>
    %111 = vector.broadcast %0 : vector<1x128xf32> to vector<8x128xf32>
    %112 = arith.mulf %110, %111 : vector<8x128xf32>
    %113 = vector.broadcast %1 : vector<1x128xf32> to vector<8x128xf32>
    %114 = arith.addf %112, %113 : vector<8x128xf32>
    %115 = arith.truncf %107 : vector<8x32xf32> to vector<8x32xbf16>
    %cst_26 = arith.constant dense<0.000000e+00> : vector<8x128xf32>
    %116 = tpu.matmul %115, %2, %cst_26 {dimension_numbers = #tpu.dot_dimension_numbers<[1], [0], [0], [1], [0, 0, 1, 1], [], []>} : vector<8x32xbf16>, vector<32x128xbf16>, vector<8x128xf32> -> vector<8x128xf32>
    %117 = arith.addf %114, %116 : vector<8x128xf32>
    %cst_27 = arith.constant 0.000000e+00 : f32
    %118 = vector.broadcast %cst_27 : f32 to vector<8x128xf32>
    %119 = arith.subf %118, %117 : vector<8x128xf32>
    %120 = math.exp %119 : vector<8x128xf32>
    %cst_28 = arith.constant 1.000000e+00 : f32
    %121 = vector.broadcast %cst_28 : f32 to vector<8x128xf32>
    %122 = arith.addf %121, %120 : vector<8x128xf32>
    %cst_29 = arith.constant 1.000000e+00 : f32
    %123 = vector.broadcast %cst_29 : f32 to vector<8x128xf32>
    %124 = arith.divf %123, %122 : vector<8x128xf32>
    %125 = math.tanh %117 : vector<8x128xf32>
    %126 = vector.extract_strided_slice %124 {offsets = [0, 0], sizes = [8, 32], strides = [1, 1]} : vector<8x128xf32> to vector<8x32xf32>
    %127 = vector.extract_strided_slice %124 {offsets = [0, 32], sizes = [8, 32], strides = [1, 1]} : vector<8x128xf32> to vector<8x32xf32>
    %128 = vector.extract_strided_slice %124 {offsets = [0, 64], sizes = [8, 32], strides = [1, 1]} : vector<8x128xf32> to vector<8x32xf32>
    %129 = vector.extract_strided_slice %125 {offsets = [0, 96], sizes = [8, 32], strides = [1, 1]} : vector<8x128xf32> to vector<8x32xf32>
    %130 = arith.mulf %127, %105 : vector<8x32xf32>
    %131 = arith.mulf %126, %129 : vector<8x32xf32>
    %132 = arith.addf %130, %131 : vector<8x32xf32>
    %133 = math.tanh %132 : vector<8x32xf32>
    %134 = arith.mulf %128, %133 : vector<8x32xf32>
    %c5_i32 = arith.constant 5 : i32
    %c0_30 = arith.constant 0 : index
    %135 = arith.index_cast %c5_i32 : i32 to index
    %136 = vector.load %arg1[%c0_30, %135] : memref<8x8xf32, #tpu.memory_space<vmem>>, vector<8x1xf32>
    %137 = vector.broadcast %136 : vector<8x1xf32> to vector<8x128xf32>
    %138 = vector.broadcast %0 : vector<1x128xf32> to vector<8x128xf32>
    %139 = arith.mulf %137, %138 : vector<8x128xf32>
    %140 = vector.broadcast %1 : vector<1x128xf32> to vector<8x128xf32>
    %141 = arith.addf %139, %140 : vector<8x128xf32>
    %142 = arith.truncf %134 : vector<8x32xf32> to vector<8x32xbf16>
    %cst_31 = arith.constant dense<0.000000e+00> : vector<8x128xf32>
    %143 = tpu.matmul %142, %2, %cst_31 {dimension_numbers = #tpu.dot_dimension_numbers<[1], [0], [0], [1], [0, 0, 1, 1], [], []>} : vector<8x32xbf16>, vector<32x128xbf16>, vector<8x128xf32> -> vector<8x128xf32>
    %144 = arith.addf %141, %143 : vector<8x128xf32>
    %cst_32 = arith.constant 0.000000e+00 : f32
    %145 = vector.broadcast %cst_32 : f32 to vector<8x128xf32>
    %146 = arith.subf %145, %144 : vector<8x128xf32>
    %147 = math.exp %146 : vector<8x128xf32>
    %cst_33 = arith.constant 1.000000e+00 : f32
    %148 = vector.broadcast %cst_33 : f32 to vector<8x128xf32>
    %149 = arith.addf %148, %147 : vector<8x128xf32>
    %cst_34 = arith.constant 1.000000e+00 : f32
    %150 = vector.broadcast %cst_34 : f32 to vector<8x128xf32>
    %151 = arith.divf %150, %149 : vector<8x128xf32>
    %152 = math.tanh %144 : vector<8x128xf32>
    %153 = vector.extract_strided_slice %151 {offsets = [0, 0], sizes = [8, 32], strides = [1, 1]} : vector<8x128xf32> to vector<8x32xf32>
    %154 = vector.extract_strided_slice %151 {offsets = [0, 32], sizes = [8, 32], strides = [1, 1]} : vector<8x128xf32> to vector<8x32xf32>
    %155 = vector.extract_strided_slice %151 {offsets = [0, 64], sizes = [8, 32], strides = [1, 1]} : vector<8x128xf32> to vector<8x32xf32>
    %156 = vector.extract_strided_slice %152 {offsets = [0, 96], sizes = [8, 32], strides = [1, 1]} : vector<8x128xf32> to vector<8x32xf32>
    %157 = arith.mulf %154, %132 : vector<8x32xf32>
    %158 = arith.mulf %153, %156 : vector<8x32xf32>
    %159 = arith.addf %157, %158 : vector<8x32xf32>
    %160 = math.tanh %159 : vector<8x32xf32>
    %161 = arith.mulf %155, %160 : vector<8x32xf32>
    %c6_i32 = arith.constant 6 : i32
    %c0_35 = arith.constant 0 : index
    %162 = arith.index_cast %c6_i32 : i32 to index
    %163 = vector.load %arg1[%c0_35, %162] : memref<8x8xf32, #tpu.memory_space<vmem>>, vector<8x1xf32>
    %164 = vector.broadcast %163 : vector<8x1xf32> to vector<8x128xf32>
    %165 = vector.broadcast %0 : vector<1x128xf32> to vector<8x128xf32>
    %166 = arith.mulf %164, %165 : vector<8x128xf32>
    %167 = vector.broadcast %1 : vector<1x128xf32> to vector<8x128xf32>
    %168 = arith.addf %166, %167 : vector<8x128xf32>
    %169 = arith.truncf %161 : vector<8x32xf32> to vector<8x32xbf16>
    %cst_36 = arith.constant dense<0.000000e+00> : vector<8x128xf32>
    %170 = tpu.matmul %169, %2, %cst_36 {dimension_numbers = #tpu.dot_dimension_numbers<[1], [0], [0], [1], [0, 0, 1, 1], [], []>} : vector<8x32xbf16>, vector<32x128xbf16>, vector<8x128xf32> -> vector<8x128xf32>
    %171 = arith.addf %168, %170 : vector<8x128xf32>
    %cst_37 = arith.constant 0.000000e+00 : f32
    %172 = vector.broadcast %cst_37 : f32 to vector<8x128xf32>
    %173 = arith.subf %172, %171 : vector<8x128xf32>
    %174 = math.exp %173 : vector<8x128xf32>
    %cst_38 = arith.constant 1.000000e+00 : f32
    %175 = vector.broadcast %cst_38 : f32 to vector<8x128xf32>
    %176 = arith.addf %175, %174 : vector<8x128xf32>
    %cst_39 = arith.constant 1.000000e+00 : f32
    %177 = vector.broadcast %cst_39 : f32 to vector<8x128xf32>
    %178 = arith.divf %177, %176 : vector<8x128xf32>
    %179 = math.tanh %171 : vector<8x128xf32>
    %180 = vector.extract_strided_slice %178 {offsets = [0, 0], sizes = [8, 32], strides = [1, 1]} : vector<8x128xf32> to vector<8x32xf32>
    %181 = vector.extract_strided_slice %178 {offsets = [0, 32], sizes = [8, 32], strides = [1, 1]} : vector<8x128xf32> to vector<8x32xf32>
    %182 = vector.extract_strided_slice %178 {offsets = [0, 64], sizes = [8, 32], strides = [1, 1]} : vector<8x128xf32> to vector<8x32xf32>
    %183 = vector.extract_strided_slice %179 {offsets = [0, 96], sizes = [8, 32], strides = [1, 1]} : vector<8x128xf32> to vector<8x32xf32>
    %184 = arith.mulf %181, %159 : vector<8x32xf32>
    %185 = arith.mulf %180, %183 : vector<8x32xf32>
    %186 = arith.addf %184, %185 : vector<8x32xf32>
    %187 = math.tanh %186 : vector<8x32xf32>
    %188 = arith.mulf %182, %187 : vector<8x32xf32>
    %c7_i32 = arith.constant 7 : i32
    %c0_40 = arith.constant 0 : index
    %189 = arith.index_cast %c7_i32 : i32 to index
    %190 = vector.load %arg1[%c0_40, %189] : memref<8x8xf32, #tpu.memory_space<vmem>>, vector<8x1xf32>
    %191 = vector.broadcast %190 : vector<8x1xf32> to vector<8x128xf32>
    %192 = vector.broadcast %0 : vector<1x128xf32> to vector<8x128xf32>
    %193 = arith.mulf %191, %192 : vector<8x128xf32>
    %194 = vector.broadcast %1 : vector<1x128xf32> to vector<8x128xf32>
    %195 = arith.addf %193, %194 : vector<8x128xf32>
    %196 = arith.truncf %188 : vector<8x32xf32> to vector<8x32xbf16>
    %cst_41 = arith.constant dense<0.000000e+00> : vector<8x128xf32>
    %197 = tpu.matmul %196, %2, %cst_41 {dimension_numbers = #tpu.dot_dimension_numbers<[1], [0], [0], [1], [0, 0, 1, 1], [], []>} : vector<8x32xbf16>, vector<32x128xbf16>, vector<8x128xf32> -> vector<8x128xf32>
    %198 = arith.addf %195, %197 : vector<8x128xf32>
    %cst_42 = arith.constant 0.000000e+00 : f32
    %199 = vector.broadcast %cst_42 : f32 to vector<8x128xf32>
    %200 = arith.subf %199, %198 : vector<8x128xf32>
    %201 = math.exp %200 : vector<8x128xf32>
    %cst_43 = arith.constant 1.000000e+00 : f32
    %202 = vector.broadcast %cst_43 : f32 to vector<8x128xf32>
    %203 = arith.addf %202, %201 : vector<8x128xf32>
    %cst_44 = arith.constant 1.000000e+00 : f32
    %204 = vector.broadcast %cst_44 : f32 to vector<8x128xf32>
    %205 = arith.divf %204, %203 : vector<8x128xf32>
    %206 = math.tanh %198 : vector<8x128xf32>
    %207 = vector.extract_strided_slice %205 {offsets = [0, 0], sizes = [8, 32], strides = [1, 1]} : vector<8x128xf32> to vector<8x32xf32>
    %208 = vector.extract_strided_slice %205 {offsets = [0, 32], sizes = [8, 32], strides = [1, 1]} : vector<8x128xf32> to vector<8x32xf32>
    %209 = vector.extract_strided_slice %205 {offsets = [0, 64], sizes = [8, 32], strides = [1, 1]} : vector<8x128xf32> to vector<8x32xf32>
    %210 = vector.extract_strided_slice %206 {offsets = [0, 96], sizes = [8, 32], strides = [1, 1]} : vector<8x128xf32> to vector<8x32xf32>
    %211 = arith.mulf %208, %186 : vector<8x32xf32>
    %212 = arith.mulf %207, %210 : vector<8x32xf32>
    %213 = arith.addf %211, %212 : vector<8x32xf32>
    %214 = math.tanh %213 : vector<8x32xf32>
    %215 = arith.mulf %209, %214 : vector<8x32xf32>
    %c7_i32_45 = arith.constant 7 : i32
    %c0_46 = arith.constant 0 : index
    %c0_47 = arith.constant 0 : index
    %216 = vector.load %arg5[%c0_46, %c0_47] : memref<8x32xf32, #tpu.memory_space<vmem>>, vector<8x32xf32>
    tpu.vector_store %arg5[%c0_46, %c0_47], %215 {strides = array<i32>} : memref<8x32xf32, #tpu.memory_space<vmem>>, vector<8x32xf32>,
    return
  }
  func.func @transform_0(%arg0: i32) -> (i32, i32) {
    %c0_i32 = arith.constant 0 : i32
    %c0_i32_0 = arith.constant 0 : i32
    return %arg0, %c0_i32 : i32, i32
  }
  func.func @transform_1(%arg0: i32) -> (i32, i32) {
    %c0_i32 = arith.constant 0 : i32
    %c0_i32_0 = arith.constant 0 : i32
    %c0_i32_1 = arith.constant 0 : i32
    return %c0_i32, %c0_i32_0 : i32, i32
  }
  func.func @transform_2(%arg0: i32) -> (i32, i32) {
    %c0_i32 = arith.constant 0 : i32
    %c0_i32_0 = arith.constant 0 : i32
    %c0_i32_1 = arith.constant 0 : i32
    return %c0_i32, %c0_i32_0 : i32, i32
  }
  func.func @transform_3(%arg0: i32) -> (i32, i32) {
    %c0_i32 = arith.constant 0 : i32
    %c0_i32_0 = arith.constant 0 : i32
    %c0_i32_1 = arith.constant 0 : i32
    return %c0_i32, %c0_i32_0 : i32, i32
  }
  func.func @transform_4(%arg0: i32) -> (i32, i32) {
    %c0_i32 = arith.constant 0 : i32
    %c0_i32_0 = arith.constant 0 : i32
    return %arg0, %c0_i32 : i32, i32
  }
}

</mosaic_0001>

<bundles_post_ra>
// kernel: tpu_custom_call.1
= control target key start
LH: loop header
LB: loop body
LE: loop exit
PB: predicated region body
PF: predicated region fallthrough
CT: control target
= control target key end

     0   :  { %9 = vsyncpa [#allocation3], 0  ;;  %s1133_s0 = inlined_call_operand.hbm [shape: f32[8,8], index: 0, kind: input, shape index: {}]   ;;  %s1134_s1 = inlined_call_operand.vmem [shape: f32[1,128], index: 1, kind: input, shape index: {}]   ;;  %s1135_s2 = inlined_call_operand.vmem [shape: f32[1,128], index: 2, kind: input, shape index: {}]   ;;  %s1136_s3 = inlined_call_operand.hbm [shape: bf16[32,128], index: 3, kind: input, shape index: {}]   ;;  %s1137_s4 = inlined_call_operand.hbm [shape: f32[8,32], index: 4, kind: output, shape index: {}]  }
   0x1   :  { %10 = vsyncpa [#allocation6], 0 }
   0x2   :  { %11 = vsyncpa [#allocation4], 0  ;;  %s925_s15 = smov [#allocation2]   ;;  %s926_s17 = smov [#allocation5]  }
   0x3   :  { %s18_s16 = sshll.u32 %s925_s15, 4  ;;  %s31_s18 = sshll.u32 %s926_s17, 4  ;;  %s19_s16 = int_to_ptr.vmem [resolvable:$true] %s18_s16  ;;  %s966_s18 = int_to_ptr.vmem [resolvable:$true] %s31_s18 }
   0x4   :  { %s853_s21 = scalar_lea.hbm %s1133_s0, 128 }
   0x5   :  { %p854_p0 = scmp.ne.s32.totalorder %s1133_s0, %s853_s21  ;;  %p857_p1 = scmp.lt.u32.totalorder %s853_s21, %s1133_s0 }
   0x7   :  { %p859_p2 = pnand %p857_p1, %p854_p0 }
   0x9   :  { %862 = shalt.err (!%p859_p2)
}
   0xa   :  { %s863_s26 = scalar_lea.vmem %s19_s16, 128  ;;  %p868_p4 = scmp.lt.s32.totalorder %s19_s16, %s19_s16 }
   0xb   :  { %p864_p3 = scmp.ne.s32.totalorder %s19_s16, %s863_s26  ;;  %p869_p5 = scmp.lt.s32.totalorder %s863_s26, %s863_s26 }
   0xd   :  { %p870_p6 = por %p869_p5, %p868_p4 }
   0xf   :  { %p871_p7 = pnand %p870_p6, %p864_p3 }
  0x11   :  { %874 = shalt.err (!%p871_p7)
}
  0x12   :  { %21 = dma.hbm_to_vmem [thread:$0]  %s1133_s0, 128, %s19_s16, [#allocation3]  }
  0x13   :  { %s875_s5 = scalar_lea.hbm %s1136_s3, 256 }
  0x14   :  { %p876_p8 = scmp.ne.s32.totalorder %s1136_s3, %s875_s5  ;;  %p879_p9 = scmp.lt.u32.totalorder %s875_s5, %s1136_s3 }
  0x16   :  { %p881_p10 = pnand %p879_p9, %p876_p8 }
  0x18   :  { %884 = shalt.err (!%p881_p10)
}
  0x19   :  { %s885_s10 = scalar_lea.vmem %s966_s18, 256  ;;  %p890_p12 = scmp.lt.s32.totalorder %s966_s18, %s966_s18 }
  0x1a   :  { %p886_p11 = scmp.ne.s32.totalorder %s966_s18, %s885_s10  ;;  %p891_p13 = scmp.lt.s32.totalorder %s885_s10, %s885_s10 }
  0x1c   :  { %p892_p0 = por %p891_p13, %p890_p12 }
  0x1e   :  { %p893_p1 = pnand %p892_p0, %p886_p11 }
  0x20   :  { %896 = shalt.err (!%p893_p1)
}
  0x21   :  { %s927_s0 = smov 64   ;;  %s928_s11 = smov 4  }
  0x22   :  { %37 = dma.hbm_to_vmem [thread:$0]  %s1136_s3, 256, %s966_s18, [#allocation6], %s927_s0, %s927_s0, %s928_s11  }
  0x23   :  { %919 = dma.done.wait [#allocation3], 128  }
  0x24   :  { %920 = vsyncadd [#allocation3], 4294967168 }
  0x25   :  { %921 = dma.done.wait [#allocation6], 256  }
  0x26   :  { %922 = vsyncadd [#allocation6], 4294967040  ;;  %v929_v0 = vmov 0   ;;  %v999_v1 = vld [vmem:[#allocation2] sm:$0xff]  ;;  %s930_s3 = smov 32   ;;  %v1016_v18 = vld [vmem:[#allocation5] sm:$0xff]  }
  0x27   :  { %779 = vset.pattern.permute.xlu0 %v929_v0  ;;  %v1005_v2 = vld [vmem:[%s1134_s1] ss:$0 sm:$0xff]  ;;  %v931_v19 = vmov 0.0   ;;  %vm932_vm0 = vmmov 0   ;;  %v1022_v20 = vld [vmem:[#allocation5 + $0x8] sm:$0xff]   ;;  %v933_v22 = vmov 1  }
  0x28   :  { %54 = vperm.xlu0 %779, %v999_v1   ;;  %v1010_v4 = vld [vmem:[%s1135_s2] ss:$0 sm:$0xff]  ;;  %707 = vmatprep.subr.bf16.mxu0 %v931_v19  ;;  %vm117_vm1 = vcmask 261120   ;;  %v934_v47 = vmov 2   ;;  %s940_s1 = smov [#allocation7]  }
  0x29   :  { %711 = vmatprep.mubr.msk.bf16.mxu0 %vm932_vm0, %v931_v19  ;;  %708 = vmatpush3.bf16.msra.mxu0 %v1016_v18  ;;  %s665_s2 = sshll.u32 %s940_s1, 4  ;;  %s666_s2 = int_to_ptr.vmem [resolvable:$true] %s665_s2 }
  0x2a   :  { %715 = vmatprep.subr.bf16.mxu1 %v931_v19  ;;  %709 = vmatprep.subr.bf16.mxu0 %v931_v19  ;;  %s897_s18 = scalar_lea.vmem %s666_s2, 128  ;;  %p902_p3 = scmp.lt.s32.totalorder %s666_s2, %s666_s2 }
  0x2b   :  { %716 = vmatpush3.bf16.msra.mxu1 %v1016_v18  ;;  %719 = vmatprep.mubr.msk.bf16.mxu1 %vm932_vm0, %v931_v19  ;;  %p898_p2 = scmp.ne.s32.totalorder %s666_s2, %s897_s18  ;;  %p903_p4 = scmp.lt.s32.totalorder %s897_s18, %s897_s18 }
  0x2c   :  { %717 = vmatprep.subr.bf16.mxu1 %v931_v19  ;;  %780 = vset.pattern.permute.xlu1 %v933_v22 }
  0x2d   :  { %710 = vmatpush3.bf16.msra.mxu0 %v1022_v20  ;;  %781 = vset.pattern.permute.xlu0 %v934_v47  ;;  %p904_p5 = por %p903_p4, %p902_p3 }
  0x2e   :  { %723 = vmatprep.subr.bf16.mxu0 %v931_v19 }
  0x2f   :  { %718 = vmatpush3.bf16.msra.mxu1 %v1022_v20  ;;  %p905_p6 = pnand %p904_p5, %p898_p2 }
  0x30   :  { %731 = vmatprep.subr.bf16.mxu1 %v931_v19 }
  0xa7   :  { %v55_v3 = vpop.permute.xlu0 %54 }
  0xa8   :  { %v63_v5 = vmul.f32 %v1005_v2, %v55_v3 }
  0xaa   :  { %v70_v6 = vadd.f32 %v1010_v4, %v63_v5 }
  0xac   :  { %789 = vtanh.f32 %v70_v6  ;;  %v71_v8 = vsub.f32 0.0, %v70_v6 }
  0xae   :  { %v72_v9 = vmul.f32 1.442695, %v71_v8 }
  0xb0   :  { %791 = vpow2.f32 %v72_v9 }
  0xb6   :  { %v790_v7 = vpop.eup %789 }
  0xb7   :  { %80 = vrot.lane.b32.xlu0 %v790_v7, %s930_s3 }
  0xba   :  { %v792_v10 = vpop.eup %791 }
  0xbb   :  { %v74_v11 = vadd.f32 1.0, %v792_v10 }
  0xbd   :  { %793 = vrcp.f32 %v74_v11  ;;  %v935_v11 = vmov 3  }
  0xc7   :  { %v794_v12 = vpop.eup %793 }
  0xc8   :  { %v78_v15 = vmul.f32 0.0, %v794_v12 }
 0x129   :  { %v81_v13 = vpop.permute.xlu0 %80 }
 0x12a   :  { %v83_v14 = vmul.f32 %v794_v12, %v81_v13 }
 0x12c   :  { %85 = vrot.lane.b32.xlu1 %v83_v14, %s930_s3 }
 0x19e   :  { %v86_v16 = vpop.permute.xlu1 %85 }
 0x19f   :  { %v88_v17 = vadd.f32 %v86_v16, %v78_v15 }
 0x1a1   :  { %795 = vtanh.f32 %v88_v17 }
 0x1ab   :  { %v796_v21 = vpop.eup %795 }
 0x1ac   :  { %91 = vrot.lane.b32.xlu1 %v796_v21, %s930_s3 }
 0x1b0   :  { %96 = vperm.xlu1 %780, %v999_v1  }
 0x21e   :  { %v92_v23 = vpop.permute.xlu1 %91 }
 0x21f   :  { %v94_v24 = vmul.f32 %v794_v12, %v92_v23 }
 0x221   :  { %v101_v25 = vpack.c.bf16 %v94_v24, %v94_v24 }
 0x223   :  { %103 = vrot.lane.b32.xlu0 %v101_v25, %s927_s0 }
 0x22f   :  { %v97_v27 = vpop.permute.xlu1 %96 }
 0x230   :  { %v99_v28 = vmul.f32 %v1005_v2, %v97_v27 }
 0x232   :  { %v100_v29 = vadd.f32 %v1010_v4, %v99_v28 }
 0x295   :  { %v104_v26 = vpop.permute.xlu0 %103 }
 0x296   :  { %712 = vmatmul.mubr.msk.bf16.vlgmr.msra.gmra.mrb[0].mxu0 %vm117_vm1, %v104_v26 }
 0x297   :  { %724 = vmatpush3.bf16.msra.mxu0 %v1016_v18  ;;  %727 = vmatprep.mubr.msk.bf16.mxu0 %vm932_vm0, %v931_v19 }
 0x298   :  { %725 = vmatprep.subr.bf16.mxu0 %v931_v19 }
 0x29b   :  { %726 = vmatpush3.bf16.msra.mxu0 %v1022_v20 }
 0x29c   :  { %739 = vmatprep.subr.bf16.mxu0 %v931_v19 }
 0x369   :  { %v155_v30 = vpop.f32.mrb[0].mxu0 }
 0x36a   :  { %v161_v31 = vadd.f32 %v155_v30, %v100_v29  ;;  %v713_v32 = vpop.f32.mrb[1].mxu0 }
 0x36b   :  { %v158_v33 = vpop.f32.mrb[2].mxu0 }
 0x36c   :  { %797 = vtanh.f32 %v161_v31  ;;  %v714_v34 = vpop.f32.mrb[3].mxu0  ;;  %v162_v36 = vsub.f32 0.0, %v161_v31 }
 0x36e   :  { %v163_v37 = vmul.f32 1.442695, %v162_v36 }
 0x370   :  { %799 = vpow2.f32 %v163_v37 }
 0x376   :  { %v798_v35 = vpop.eup %797 }
 0x377   :  { %171 = vrot.lane.b32.xlu0 %v798_v35, %s930_s3 }
 0x37a   :  { %v800_v38 = vpop.eup %799 }
 0x37b   :  { %v165_v39 = vadd.f32 1.0, %v800_v38 }
 0x37d   :  { %801 = vrcp.f32 %v165_v39  ;;  %v936_v39 = vmov 4  }
 0x387   :  { %v802_v40 = vpop.eup %801 }
 0x388   :  { %v169_v43 = vmul.f32 %v802_v40, %v88_v17 }
 0x3e9   :  { %v172_v41 = vpop.permute.xlu0 %171 }
 0x3ea   :  { %v174_v42 = vmul.f32 %v802_v40, %v172_v41 }
 0x3ec   :  { %176 = vrot.lane.b32.xlu1 %v174_v42, %s930_s3 }
 0x45e   :  { %v177_v44 = vpop.permute.xlu1 %176 }
 0x45f   :  { %v179_v45 = vadd.f32 %v177_v44, %v169_v43 }
 0x461   :  { %803 = vtanh.f32 %v179_v45 }
 0x46b   :  { %v804_v46 = vpop.eup %803 }
 0x46c   :  { %182 = vrot.lane.b32.xlu0 %v804_v46, %s930_s3 }
 0x470   :  { %187 = vperm.xlu0 %781, %v999_v1  }
 0x474   :  { %782 = vset.pattern.permute.xlu0 %v935_v11 }
 0x4de   :  { %v183_v48 = vpop.permute.xlu0 %182 }
 0x4df   :  { %v185_v49 = vmul.f32 %v802_v40, %v183_v48 }
 0x4e1   :  { %v192_v50 = vpack.c.bf16 %v185_v49, %v185_v49 }
 0x4e3   :  { %194 = vrot.lane.b32.xlu1 %v192_v50, %s927_s0 }
 0x4ef   :  { %v188_v52 = vpop.permute.xlu0 %187 }
 0x4f0   :  { %v190_v53 = vmul.f32 %v1005_v2, %v188_v52 }
 0x4f2   :  { %v191_v54 = vadd.f32 %v1010_v4, %v190_v53 }
 0x555   :  { %v195_v51 = vpop.permute.xlu1 %194 }
 0x556   :  { %720 = vmatmul.mubr.msk.bf16.vlgmr.msra.gmra.mrb[0].mxu1 %vm117_vm1, %v195_v51 }
 0x557   :  { %732 = vmatpush3.bf16.msra.mxu1 %v1016_v18  ;;  %735 = vmatprep.mubr.msk.bf16.mxu1 %vm932_vm0, %v931_v19 }
 0x558   :  { %733 = vmatprep.subr.bf16.mxu1 %v931_v19 }
 0x55b   :  { %734 = vmatpush3.bf16.msra.mxu1 %v1022_v20 }
 0x55c   :  { %747 = vmatprep.subr.bf16.mxu1 %v931_v19 }
 0x629   :  { %v233_v55 = vpop.f32.mrb[0].mxu1 }
 0x62a   :  { %v239_v56 = vadd.f32 %v233_v55, %v191_v54  ;;  %v721_v57 = vpop.f32.mrb[1].mxu1 }
 0x62b   :  { %v236_v58 = vpop.f32.mrb[2].mxu1 }
 0x62c   :  { %805 = vtanh.f32 %v239_v56  ;;  %v722_v59 = vpop.f32.mrb[3].mxu1  ;;  %v240_v61 = vsub.f32 0.0, %v239_v56 }
 0x62e   :  { %v241_v62 = vmul.f32 1.442695, %v240_v61 }
 0x630   :  { %807 = vpow2.f32 %v241_v62 }
 0x636   :  { %v806_v60 = vpop.eup %805 }
 0x637   :  { %249 = vrot.lane.b32.xlu1 %v806_v60, %s930_s3 }
 0x63a   :  { %v808_v63 = vpop.eup %807 }
 0x63b   :  { %v243_v0 = vadd.f32 1.0, %v808_v63 }
 0x63d   :  { %809 = vrcp.f32 %v243_v0  ;;  %v937_v0 = vmov 5  }
 0x647   :  { %v810_v3 = vpop.eup %809 }
 0x648   :  { %v247_v7 = vmul.f32 %v810_v3, %v179_v45 }
 0x6a9   :  { %v250_v5 = vpop.permute.xlu1 %249 }
 0x6aa   :  { %v252_v6 = vmul.f32 %v810_v3, %v250_v5 }
 0x6ac   :  { %254 = vrot.lane.b32.xlu1 %v252_v6, %s930_s3 }
 0x71e   :  { %v255_v8 = vpop.permute.xlu1 %254 }
 0x71f   :  { %v257_v9 = vadd.f32 %v255_v8, %v247_v7 }
 0x721   :  { %811 = vtanh.f32 %v257_v9 }
 0x72b   :  { %v812_v10 = vpop.eup %811 }
 0x72c   :  { %260 = vrot.lane.b32.xlu0 %v812_v10, %s930_s3 }
 0x730   :  { %265 = vperm.xlu0 %782, %v999_v1  }
 0x734   :  { %783 = vset.pattern.permute.xlu0 %v936_v39 }
 0x79e   :  { %v261_v12 = vpop.permute.xlu0 %260 }
 0x79f   :  { %v263_v13 = vmul.f32 %v810_v3, %v261_v12 }
 0x7a1   :  { %v270_v14 = vpack.c.bf16 %v263_v13, %v263_v13 }
 0x7a3   :  { %272 = vrot.lane.b32.xlu1 %v270_v14, %s927_s0 }
 0x7af   :  { %v266_v16 = vpop.permute.xlu0 %265 }
 0x7b0   :  { %v268_v17 = vmul.f32 %v1005_v2, %v266_v16 }
 0x7b2   :  { %v269_v21 = vadd.f32 %v1010_v4, %v268_v17 }
 0x815   :  { %v273_v15 = vpop.permute.xlu1 %272 }
 0x816   :  { %728 = vmatmul.mubr.msk.bf16.vlgmr.msra.gmra.mrb[4].mxu0 %vm117_vm1, %v273_v15 }
 0x817   :  { %740 = vmatpush3.bf16.msra.mxu0 %v1016_v18  ;;  %743 = vmatprep.mubr.msk.bf16.mxu0 %vm932_vm0, %v931_v19 }
 0x818   :  { %741 = vmatprep.subr.bf16.mxu0 %v931_v19 }
 0x81b   :  { %742 = vmatpush3.bf16.msra.mxu0 %v1022_v20 }
 0x81c   :  { %755 = vmatprep.subr.bf16.mxu0 %v931_v19 }
 0x8e9   :  { %v311_v22 = vpop.f32.mrb[4].mxu0 }
 0x8ea   :  { %v317_v23 = vadd.f32 %v311_v22, %v269_v21  ;;  %v729_v24 = vpop.f32.mrb[5].mxu0 }
 0x8eb   :  { %v314_v25 = vpop.f32.mrb[6].mxu0 }
 0x8ec   :  { %813 = vtanh.f32 %v317_v23  ;;  %v730_v26 = vpop.f32.mrb[7].mxu0  ;;  %v318_v28 = vsub.f32 0.0, %v317_v23 }
 0x8ee   :  { %v319_v29 = vmul.f32 1.442695, %v318_v28  ;;  %v938_v28 = vmov 6  }
 0x8f0   :  { %815 = vpow2.f32 %v319_v29 }
 0x8f6   :  { %v814_v27 = vpop.eup %813 }
 0x8f7   :  { %327 = vrot.lane.b32.xlu1 %v814_v27, %s930_s3 }
 0x8fa   :  { %v816_v30 = vpop.eup %815 }
 0x8fb   :  { %v321_v31 = vadd.f32 1.0, %v816_v30 }
 0x8fd   :  { %817 = vrcp.f32 %v321_v31 }
 0x907   :  { %v818_v32 = vpop.eup %817 }
 0x908   :  { %v325_v35 = vmul.f32 %v818_v32, %v257_v9 }
 0x969   :  { %v328_v33 = vpop.permute.xlu1 %327 }
 0x96a   :  { %v330_v34 = vmul.f32 %v818_v32, %v328_v33 }
 0x96c   :  { %332 = vrot.lane.b32.xlu1 %v330_v34, %s930_s3 }
 0x9de   :  { %v333_v36 = vpop.permute.xlu1 %332 }
 0x9df   :  { %v335_v37 = vadd.f32 %v333_v36, %v325_v35 }
 0x9e1   :  { %819 = vtanh.f32 %v335_v37 }
 0x9eb   :  { %v820_v38 = vpop.eup %819 }
 0x9ec   :  { %338 = vrot.lane.b32.xlu0 %v820_v38, %s930_s3 }
 0x9f0   :  { %343 = vperm.xlu0 %783, %v999_v1  }
 0x9f4   :  { %784 = vset.pattern.permute.xlu0 %v937_v0 }
 0xa5e   :  { %v339_v40 = vpop.permute.xlu0 %338 }
 0xa5f   :  { %v341_v41 = vmul.f32 %v818_v32, %v339_v40 }
 0xa61   :  { %v348_v42 = vpack.c.bf16 %v341_v41, %v341_v41 }
 0xa63   :  { %350 = vrot.lane.b32.xlu1 %v348_v42, %s927_s0 }
 0xa6f   :  { %v344_v44 = vpop.permute.xlu0 %343 }
 0xa70   :  { %v346_v45 = vmul.f32 %v1005_v2, %v344_v44 }
 0xa72   :  { %v347_v46 = vadd.f32 %v1010_v4, %v346_v45 }
 0xad5   :  { %v351_v43 = vpop.permute.xlu1 %350 }
 0xad6   :  { %736 = vmatmul.mubr.msk.bf16.vlgmr.msra.gmra.mrb[4].mxu1 %vm117_vm1, %v351_v43 }
 0xad7   :  { %748 = vmatpush3.bf16.msra.mxu1 %v1016_v18  ;;  %751 = vmatprep.mubr.msk.bf16.mxu1 %vm932_vm0, %v931_v19 }
 0xad8   :  { %749 = vmatprep.subr.bf16.mxu1 %v931_v19 }
 0xadb   :  { %750 = vmatpush3.bf16.msra.mxu1 %v1022_v20 }
 0xba9   :  { %v389_v47 = vpop.f32.mrb[4].mxu1 }
 0xbaa   :  { %v395_v48 = vadd.f32 %v389_v47, %v347_v46  ;;  %v737_v49 = vpop.f32.mrb[5].mxu1 }
 0xbab   :  { %v392_v50 = vpop.f32.mrb[6].mxu1 }
 0xbac   :  { %821 = vtanh.f32 %v395_v48  ;;  %v738_v51 = vpop.f32.mrb[7].mxu1  ;;  %v396_v53 = vsub.f32 0.0, %v395_v48 }
 0xbae   :  { %v397_v54 = vmul.f32 1.442695, %v396_v53  ;;  %v939_v53 = vmov 7  }
 0xbb0   :  { %823 = vpow2.f32 %v397_v54 }
 0xbb6   :  { %v822_v52 = vpop.eup %821 }
 0xbb7   :  { %405 = vrot.lane.b32.xlu1 %v822_v52, %s930_s3 }
 0xbba   :  { %v824_v55 = vpop.eup %823 }
 0xbbb   :  { %v399_v56 = vadd.f32 1.0, %v824_v55 }
 0xbbd   :  { %825 = vrcp.f32 %v399_v56 }
 0xbc7   :  { %v826_v57 = vpop.eup %825 }
 0xbc8   :  { %v403_v60 = vmul.f32 %v826_v57, %v335_v37 }
 0xc29   :  { %v406_v58 = vpop.permute.xlu1 %405 }
 0xc2a   :  { %v408_v59 = vmul.f32 %v826_v57, %v406_v58 }
 0xc2c   :  { %410 = vrot.lane.b32.xlu1 %v408_v59, %s930_s3 }
 0xc9e   :  { %v411_v61 = vpop.permute.xlu1 %410 }
 0xc9f   :  { %v413_v62 = vadd.f32 %v411_v61, %v403_v60 }
 0xca1   :  { %827 = vtanh.f32 %v413_v62 }
 0xcab   :  { %v828_v63 = vpop.eup %827 }
 0xcac   :  { %416 = vrot.lane.b32.xlu0 %v828_v63, %s930_s3 }
 0xcb0   :  { %421 = vperm.xlu0 %784, %v999_v1  }
 0xcb4   :  { %785 = vset.pattern.permute.xlu0 %v938_v28 }
 0xd1e   :  { %v417_v3 = vpop.permute.xlu0 %416 }
 0xd1f   :  { %v419_v5 = vmul.f32 %v826_v57, %v417_v3 }
 0xd21   :  { %v426_v6 = vpack.c.bf16 %v419_v5, %v419_v5 }
 0xd23   :  { %428 = vrot.lane.b32.xlu1 %v426_v6, %s927_s0 }
 0xd2f   :  { %v422_v8 = vpop.permute.xlu0 %421 }
 0xd30   :  { %v424_v9 = vmul.f32 %v1005_v2, %v422_v8 }
 0xd32   :  { %v425_v10 = vadd.f32 %v1010_v4, %v424_v9 }
 0xd95   :  { %v429_v7 = vpop.permute.xlu1 %428 }
 0xd96   :  { %744 = vmatmul.mubr.msk.bf16.vlgmr.msra.gmra.mrb[8].mxu0 %vm117_vm1, %v429_v7 }
 0xd97   :  { %756 = vmatpush3.bf16.msra.mxu0 %v1016_v18  ;;  %759 = vmatprep.mubr.msk.bf16.mxu0 %vm932_vm0, %v931_v19 }
 0xd98   :  { %757 = vmatprep.subr.bf16.mxu0 %v931_v19 }
 0xd9b   :  { %758 = vmatpush3.bf16.msra.mxu0 %v1022_v20 }
 0xe69   :  { %v467_v11 = vpop.f32.mrb[8].mxu0 }
 0xe6a   :  { %v473_v12 = vadd.f32 %v467_v11, %v425_v10  ;;  %v745_v13 = vpop.f32.mrb[9].mxu0 }
 0xe6b   :  { %v470_v14 = vpop.f32.mrb[10].mxu0 }
 0xe6c   :  { %829 = vtanh.f32 %v473_v12  ;;  %v746_v15 = vpop.f32.mrb[11].mxu0  ;;  %v474_v18 = vsub.f32 0.0, %v473_v12 }
 0xe6e   :  { %v475_v17 = vmul.f32 1.442695, %v474_v18 }
 0xe70   :  { %831 = vpow2.f32 %v475_v17 }
 0xe76   :  { %v830_v16 = vpop.eup %829 }
 0xe77   :  { %483 = vrot.lane.b32.xlu1 %v830_v16, %s930_s3 }
 0xe7a   :  { %v832_v19 = vpop.eup %831 }
 0xe7b   :  { %v477_v21 = vadd.f32 1.0, %v832_v19 }
 0xe7d   :  { %833 = vrcp.f32 %v477_v21 }
 0xe87   :  { %v834_v20 = vpop.eup %833 }
 0xe88   :  { %v481_v24 = vmul.f32 %v834_v20, %v413_v62 }
 0xee9   :  { %v484_v22 = vpop.permute.xlu1 %483 }
 0xeea   :  { %v486_v23 = vmul.f32 %v834_v20, %v484_v22 }
 0xeec   :  { %488 = vrot.lane.b32.xlu1 %v486_v23, %s930_s3 }
 0xf5e   :  { %v489_v25 = vpop.permute.xlu1 %488 }
 0xf5f   :  { %v491_v26 = vadd.f32 %v489_v25, %v481_v24 }
 0xf61   :  { %835 = vtanh.f32 %v491_v26 }
 0xf6b   :  { %v836_v27 = vpop.eup %835 }
 0xf6c   :  { %494 = vrot.lane.b32.xlu0 %v836_v27, %s930_s3 }
 0xf70   :  { %499 = vperm.xlu0 %785, %v999_v1  }
 0xf74   :  { %786 = vset.pattern.permute.xlu0 %v939_v53 }
 0xfde   :  { %v495_v29 = vpop.permute.xlu0 %494 }
 0xfdf   :  { %v497_v30 = vmul.f32 %v834_v20, %v495_v29 }
 0xfe1   :  { %v504_v31 = vpack.c.bf16 %v497_v30, %v497_v30 }
 0xfe3   :  { %506 = vrot.lane.b32.xlu1 %v504_v31, %s927_s0 }
 0xfef   :  { %v500_v33 = vpop.permute.xlu0 %499 }
 0xff0   :  { %v502_v34 = vmul.f32 %v1005_v2, %v500_v33 }
 0xff2   :  { %v503_v35 = vadd.f32 %v1010_v4, %v502_v34 }
0x1055   :  { %v507_v32 = vpop.permute.xlu1 %506 }
0x1056   :  { %752 = vmatmul.mubr.msk.bf16.vlgmr.msra.gmra.mrb[8].mxu1 %vm117_vm1, %v507_v32 }
0x1129   :  { %v545_v36 = vpop.f32.mrb[8].mxu1 }
0x112a   :  { %v551_v37 = vadd.f32 %v545_v36, %v503_v35  ;;  %v753_v38 = vpop.f32.mrb[9].mxu1 }
0x112b   :  { %v548_v39 = vpop.f32.mrb[10].mxu1 }
0x112c   :  { %837 = vtanh.f32 %v551_v37  ;;  %v754_v40 = vpop.f32.mrb[11].mxu1  ;;  %v552_v42 = vsub.f32 0.0, %v551_v37 }
0x112e   :  { %v553_v43 = vmul.f32 1.442695, %v552_v42 }
0x1130   :  { %839 = vpow2.f32 %v553_v43 }
0x1136   :  { %v838_v41 = vpop.eup %837 }
0x1137   :  { %561 = vrot.lane.b32.xlu1 %v838_v41, %s930_s3 }
0x113a   :  { %v840_v44 = vpop.eup %839 }
0x113b   :  { %v555_v45 = vadd.f32 1.0, %v840_v44 }
0x113d   :  { %841 = vrcp.f32 %v555_v45 }
0x1147   :  { %v842_v46 = vpop.eup %841 }
0x1148   :  { %v559_v49 = vmul.f32 %v842_v46, %v491_v26 }
0x11a9   :  { %v562_v47 = vpop.permute.xlu1 %561 }
0x11aa   :  { %v564_v48 = vmul.f32 %v842_v46, %v562_v47 }
0x11ac   :  { %566 = vrot.lane.b32.xlu1 %v564_v48, %s930_s3 }
0x121e   :  { %v567_v50 = vpop.permute.xlu1 %566 }
0x121f   :  { %v569_v51 = vadd.f32 %v567_v50, %v559_v49 }
0x1221   :  { %843 = vtanh.f32 %v569_v51 }
0x122b   :  { %v844_v52 = vpop.eup %843 }
0x122c   :  { %572 = vrot.lane.b32.xlu0 %v844_v52, %s930_s3 }
0x1230   :  { %577 = vperm.xlu0 %786, %v999_v1  }
0x129e   :  { %v573_v54 = vpop.permute.xlu0 %572 }
0x129f   :  { %v575_v55 = vmul.f32 %v842_v46, %v573_v54 }
0x12a1   :  { %v582_v56 = vpack.c.bf16 %v575_v55, %v575_v55 }
0x12a3   :  { %584 = vrot.lane.b32.xlu1 %v582_v56, %s927_s0 }
0x12af   :  { %v578_v58 = vpop.permute.xlu0 %577 }
0x12b0   :  { %v580_v59 = vmul.f32 %v1005_v2, %v578_v58 }
0x12b2   :  { %v581_v60 = vadd.f32 %v1010_v4, %v580_v59 }
0x1315   :  { %v585_v57 = vpop.permute.xlu1 %584 }
0x1316   :  { %760 = vmatmul.mubr.msk.bf16.vlgmr.msra.gmra.mrb[12].mxu0 %vm117_vm1, %v585_v57 }
0x13e9   :  { %v623_v61 = vpop.f32.mrb[12].mxu0 }
0x13ea   :  { %v629_v62 = vadd.f32 %v623_v61, %v581_v60  ;;  %v761_v63 = vpop.f32.mrb[13].mxu0 }
0x13eb   :  { %v626_v0 = vpop.f32.mrb[14].mxu0 }
0x13ec   :  { %845 = vtanh.f32 %v629_v62  ;;  %v762_v3 = vpop.f32.mrb[15].mxu0  ;;  %v630_v5 = vsub.f32 0.0, %v629_v62 }
0x13ee   :  { %v631_v6 = vmul.f32 1.442695, %v630_v5 }
0x13f0   :  { %847 = vpow2.f32 %v631_v6 }
0x13f6   :  { %v846_v1 = vpop.eup %845 }
0x13f7   :  { %639 = vrot.lane.b32.xlu1 %v846_v1, %s930_s3 }
0x13fa   :  { %v848_v7 = vpop.eup %847 }
0x13fb   :  { %v633_v8 = vadd.f32 1.0, %v848_v7 }
0x13fd   :  { %849 = vrcp.f32 %v633_v8 }
0x1407   :  { %v850_v9 = vpop.eup %849 }
0x1408   :  { %v637_v4 = vmul.f32 %v850_v9, %v569_v51 }
0x1469   :  { %v640_v10 = vpop.permute.xlu1 %639 }
0x146a   :  { %v642_v2 = vmul.f32 %v850_v9, %v640_v10 }
0x146c   :  { %644 = vrot.lane.b32.xlu1 %v642_v2, %s930_s3 }
0x14de   :  { %v645_v11 = vpop.permute.xlu1 %644 }
0x14df   :  { %v647_v12 = vadd.f32 %v645_v11, %v637_v4 }
0x14e1   :  { %851 = vtanh.f32 %v647_v12 }
0x14eb   :  { %v852_v13 = vpop.eup %851 }
0x14ec   :  { %650 = vrot.lane.b32.xlu0 %v852_v13, %s930_s3 }
0x155e   :  { %v651_v14 = vpop.permute.xlu0 %650 }
0x155f   :  { %v653_v15 = vmul.f32 %v850_v9, %v651_v14 }
0x1561   :  { %655 = vrot.lane.b32.xlu1 %v653_v15, %s927_s0 }
0x15d3   :  { %v656_v16 = vpop.permute.xlu1 %655 }
0x15d4   :  { %658 = vst.msk [vmem:[#allocation7] sm:$0xff] %vm117_vm1, %v656_v16 }
0x15d5   :  { %908 = shalt.err (!%p905_p6)
}
0x15d6   :  { %s909_s21 = scalar_lea.hbm %s1137_s4, 128 }
0x15d7   :  { %p910_p7 = scmp.ne.s32.totalorder %s1137_s4, %s909_s21  ;;  %p913_p8 = scmp.lt.u32.totalorder %s909_s21, %s1137_s4 }
0x15d9   :  { %p915_p9 = pnand %p913_p8, %p910_p7 }
0x15db   :  { %918 = shalt.err (!%p915_p9)
}
0x15dc   :  { %668 = dma.vmem_to_hbm [thread:$0]  %s666_s2, 128, %s1137_s4, [#allocation4]  }
0x15dd   :  { %923 = dma.done.wait [#allocation4], 128  }
0x15de   :  { %924 = vsyncadd [#allocation4], 4294967168 }
0x15df   :  { %672 = vsyncpa [#allocation3], 1 }
0x15e0   :  { %673 = vsyncpa [#allocation6], 1 }
0x15e1   :  { %674 = vsyncpa [#allocation4], 1 }

</bundles_post_ra>
